<compile_context>
chip_gen: v7x
topology: tpu7x:2x2x1
jax: 0.10.0
libtpu: 0.0.40
codegen_flags: <defaults>
</compile_context>

<pallas_src>
import jax
import jax.numpy as jnp
from jax import lax
from jax.experimental import pallas as pl
from jax.experimental.pallas import tpu as pltpu


def _ligru_seq_kernel(xp_ref, h0_ref, wh_ref, out_ref, h_c):
    """One (batch-tile, time-chunk) grid point of the fused LiGRU recurrence.

    xp_ref : (TT, bb, 2H)  streamed pre-activations x @ [Wxz|Wxh] + [bz|bh]
    h0_ref : (bb, H)       initial hidden state (only read at the first chunk)
    wh_ref : (H, 2H)       [Whz|Whh], resident in VMEM for the whole grid
    out_ref: (TT, bb, H)   per-step hidden states (streamed out, lane-dense)
    h_c    : (bb, H) f32   hidden-state carry across time chunks
    """
    c = pl.program_id(1)

    # CORRECTNESS: the f32 carry relies on the grid iterating batch-outer /
    # time-inner (("parallel", "arbitrary")) and on this re-init at the first
    # time chunk of every batch tile.  Do not swap the grid axes or mark the
    # time axis "parallel".
    @pl.when(c == 0)
    def _():
        h_c[...] = h0_ref[...].astype(jnp.float32)

    H = h_c.shape[1]
    TT = xp_ref.shape[0]
    wh = wh_ref[...]                       # hoisted: one VMEM load per chunk

    def step(s, h):
        # Only h @ [Whz|Whh] sits on the serial critical path.
        pre = xp_ref[s].astype(jnp.float32) + jnp.dot(
            h.astype(wh.dtype), wh, preferred_element_type=jnp.float32)
        z = jax.nn.sigmoid(pre[:, :H])            # update gate    (EUP)
        h_cand = jnp.maximum(pre[:, H:], 0.0)     # relu candidate (VPU)
        # (1 - z) * h + z * h_cand rewritten with one fewer multiply
        # (algebraically equal, not bit-identical).
        h_next = h + z * (h_cand - h)
        out_ref[s] = h_next.astype(out_ref.dtype)
        return h_next

    # Unrolled so the LLO scheduler can overlap data-independent work of
    # neighbouring steps with the serial h @ Wh chain.
    h_c[...] = lax.fori_loop(0, TT, step, h_c[...], unroll=True)


def _resident_spec_kwargs():
    # A constant-index weight block only needs a single VMEM buffer; halves the
    # resident weight footprint (important on v7x's 64 MiB VMEM).  Fall back
    # silently on JAX versions without pipeline_mode support.
    if hasattr(pl, "Buffered"):
        return {"pipeline_mode": pl.Buffered(1)}
    return {}


def ligru_sequence(xs, h0, params, *, batch_block=None, time_block=None):
    """Run the LiGRU cell over a sequence.

    xs: [T, B, In], h0: [B, H].  Returns all hidden states [T, B, H]
    (identical to applying the PyTorch cell T times).
    """
    T, B, In = xs.shape
    H = h0.shape[1]
    wx, wh, b = params["wx"], params["wh"], params["b"]
    assert wx.shape == (In, 2 * H) and wh.shape == (H, 2 * H) and b.shape == (1, 2 * H)
    # Gate slicing pre[:, :H] / pre[:, H:] and the lane-dense output store rely on
    # H being a multiple of the 128-lane width (otherwise every step pays a VMEM
    # copy and masked stores).
    assert H % 128 == 0, "hidden size must be a multiple of 128 (TPU lane width)"

    if batch_block is None:
        # Prefer the largest sublane-aligned tile that still leaves >= 2 batch
        # tiles, so the "parallel" axis can shard across TensorCores (v7x
        # megacore).  Callers should pick bb >= 128 (v5e) / 256 (v6e/v7x) when
        # B allows, to fill the MXU M dimension.
        batch_block = B
        for cand in (256, 128, 64, 32, 16, 8):
            if B % cand == 0 and B // cand >= 2:
                batch_block = cand
                break
    bb = batch_block
    assert B % bb == 0, "batch must divide evenly into batch_block tiles"
    assert bb % 8 == 0 or bb == B, "batch tile must be sublane-aligned (multiple of 8)"
    nb = B // bb

    if time_block is None:
        # Chunk the time axis to amortize per-grid-step overhead (~0.35 us/step)
        # and get large, dense stream DMAs.
        time_block = 1
        for cand in (8, 4, 2):
            if T % cand == 0:
                time_block = cand
                break
    TT = time_block
    assert T % TT == 0, "sequence length must divide evenly into time_block chunks"
    nc = T // TT

    w_dtype = wh.dtype
    stream_dtype = jnp.bfloat16 if wh.dtype == jnp.bfloat16 else jnp.float32

    # Hoisted input projection: x @ [Wxz|Wxh] + [bz|bh] computed once as a single
    # large, fully MXU-efficient matmul and streamed into the recurrent kernel
    # (bf16 stream when weights are bf16 -> halves per-step HBM traffic).
    xp = (jnp.dot(xs.reshape(T * B, In).astype(w_dtype), wx,
                  precision=lax.Precision.HIGHEST,
                  preferred_element_type=jnp.float32)
          + b.astype(jnp.float32))
    xp = xp.reshape(T, B, 2 * H).astype(stream_dtype)

    # Scoped-VMEM budget for the actual resident set
    # (streamed xp/out double buffers + h0 tile + resident weights + f32 carry).
    isz = lambda dt: jnp.dtype(dt).itemsize
    vmem_needed = (2 * TT * bb * 2 * H * isz(stream_dtype)
                   + 2 * TT * bb * H * isz(h0.dtype)
                   + 2 * bb * H * isz(h0.dtype)
                   + 2 * H * 2 * H * isz(w_dtype)
                   + bb * H * 4)
    vmem_limit = int(min(max(2 * vmem_needed + (2 << 20), 16 << 20), 64 << 20))

    grid_spec = pltpu.PrefetchScalarGridSpec(
        num_scalar_prefetch=0,
        grid=(nb, nc),                 # batch tiles outer, time chunks inner (carry!)
        in_specs=[
            # Streamed pre-activation chunk (double-buffered by the default pipeline).
            pl.BlockSpec((TT, bb, 2 * H), lambda i, c: (c, i, 0)),
            # Initial hidden state tile (only read at c == 0).
            pl.BlockSpec((bb, H), lambda i, c: (i, 0)),
            # Recurrent weights: constant index_map -> DMA'd once, stay resident;
            # single-buffered to halve the resident VMEM footprint.
            pl.BlockSpec((H, 2 * H), lambda i, c: (0, 0), **_resident_spec_kwargs()),
        ],
        out_specs=pl.BlockSpec((TT, bb, H), lambda i, c: (c, i, 0)),
        scratch_shapes=[pltpu.VMEM((bb, H), jnp.float32)],   # f32 hidden-state carry
    )

    return pl.pallas_call(
        _ligru_seq_kernel,
        out_shape=jax.ShapeDtypeStruct((T, B, H), h0.dtype),
        grid_spec=grid_spec,
        compiler_params=pltpu.CompilerParams(
            # Batch tiles shard across TensorCores (v7x megacore); time chunks are
            # the sequential carry axis.
            dimension_semantics=("parallel", "arbitrary"),
            vmem_limit_bytes=vmem_limit),
    )(xp, h0, wh)


def ligru_cell(x, h, params):
    """Single LiGRUCell.forward step (PyTorch-equivalent API): x [B, In], h [B, H]."""
    return ligru_sequence(x[None], h, params, time_block=1)[0]


def init_params(key, input_size, hidden_size, dtype=jnp.float32):
    """nn.Linear-style U(-1/sqrt(fan_in), +1/sqrt(fan_in)) init, stored pre-transposed
    and concatenated as Wx=[Wxz|Wxh] [In,2H], Wh=[Whz|Whh] [H,2H], b=[bz|bh] [1,2H]."""
    ks = jax.random.split(key, 6)
    kx = 1.0 / jnp.sqrt(jnp.asarray(input_size, jnp.float32))
    kh = 1.0 / jnp.sqrt(jnp.asarray(hidden_size, jnp.float32))
    u = lambda k, shape, lim: jax.random.uniform(k, shape, jnp.float32, -lim, lim)
    wxz = u(ks[0], (input_size, hidden_size), kx)
    bz = u(ks[1], (1, hidden_size), kx)
    whz = u(ks[2], (hidden_size, hidden_size), kh)
    wxh = u(ks[3], (input_size, hidden_size), kx)
    bh = u(ks[4], (1, hidden_size), kx)
    whh = u(ks[5], (hidden_size, hidden_size), kh)
    return {
        "wx": jnp.concatenate([wxz, wxh], axis=1).astype(dtype),
        "wh": jnp.concatenate([whz, whh], axis=1).astype(dtype),
        "b": jnp.concatenate([bz, bh], axis=1).astype(dtype),
    }


def ligru_cell_ref(x, h, p):
    """Literal f32 transcription of the PyTorch LiGRUCell.forward."""
    H = h.shape[1]
    wx = p["wx"].astype(jnp.float32)
    wh = p["wh"].astype(jnp.float32)
    b = p["b"].astype(jnp.float32)
    dot = lambda a, w: jnp.dot(a, w, precision=lax.Precision.HIGHEST)
    z = jax.nn.sigmoid(dot(x, wx[:, :H]) + b[:, :H] + dot(h, wh[:, :H]))
    h_cand = jnp.maximum(dot(x, wx[:, H:]) + b[:, H:] + dot(h, wh[:, H:]), 0.0)
    return (1.0 - z) * h + z * h_cand


def _ref_scan(xs, h0, params):
    h = h0
    hs = []
    for t in range(xs.shape[0]):
        h = ligru_cell_ref(xs[t], h, params)
        hs.append(h)
    return jnp.stack(hs)


if __name__ == "__main__":
    # Small but TPU-friendly shapes: H multiple of 128 (lane-dense gates/output),
    # B multiple of 8 (sublane), T chunked into TT=8 time chunks by default.
    T, B, In, H = 16, 8, 64, 128
    key = jax.random.PRNGKey(0)
    kx, kh, kp = jax.random.split(key, 3)

    xs = jax.random.normal(kx, (T, B, In), jnp.float32)
    h0 = jax.random.normal(kh, (B, H), jnp.float32)
    params = init_params(kp, In, H, dtype=jnp.float32)

    # Fused sequence kernel (hoisted x-projection, resident Wh, chunked time axis).
    # Tolerance covers differing f32 matmul pass decomposition between XLA (reference)
    # and Mosaic (in-kernel h@Wh) plus the h + z*(h_cand - h) rewrite.
    hs = jax.block_until_ready(ligru_sequence(xs, h0, params))
    ref = _ref_scan(xs, h0, params)
    assert hs.shape == (T, B, H)
    assert jnp.allclose(hs, ref, atol=2e-3, rtol=2e-3), "sequence mismatch vs reference"

    # Explicit tiling override: multiple time chunks per batch tile.
    hs2 = jax.block_until_ready(
        ligru_sequence(xs, h0, params, batch_block=8, time_block=4))
    assert jnp.allclose(hs2, ref, atol=2e-3, rtol=2e-3), "chunked-grid mismatch"

    # Single-cell API (matches the PyTorch LiGRUCell.forward signature).
    h1 = jax.block_until_ready(ligru_cell(xs[0], h0, params))
    assert jnp.allclose(h1, ligru_cell_ref(xs[0], h0, params), atol=2e-3, rtol=2e-3), \
        "single-cell mismatch vs reference"

    # bf16-weight fast path (v5e/v6e/v7x MXU): bf16 dots + bf16 stream, f32 accumulation
    # and f32 gating/carry inside the kernel. This is the intended numeric contract
    # (x/h are cast to bf16 for the dots), hence the looser tolerance.
    params_bf16 = jax.tree.map(lambda w: w.astype(jnp.bfloat16), params)
    hs_bf16 = jax.block_until_ready(ligru_sequence(xs, h0, params_bf16))
    ref_bf16 = _ref_scan(xs, h0, params_bf16)
    assert jnp.allclose(hs_bf16, ref_bf16, atol=5e-2, rtol=5e-2), "bf16 path mismatch"

    print("KERNEL_OK")
</pallas_src>

<mosaic_0001>
module attributes {stable_mosaic.version = 11 : i64} {
  func.func @_ligru_seq_kernel(%arg0: i32, %arg1: i32, %arg2: memref<8x8x256xf32, #tpu.memory_space<vmem>>, %arg3: memref<8x128xf32, #tpu.memory_space<vmem>>, %arg4: memref<128x256xf32, #tpu.memory_space<vmem>>, %arg5: memref<8x8x128xf32, #tpu.memory_space<vmem>>, %arg6: memref<8x128xf32, #tpu.memory_space<vmem>>) attributes {dimension_semantics = [#tpu.dimension_semantics<parallel>, #tpu.dimension_semantics<arbitrary>], iteration_bounds = array<i64: 1, 2>, scalar_prefetch = 0 : i64, scratch_operands = 1 : i64, tpu.core_type = #tpu.core_type<tc>, window_params = [{transform_indices = @transform_0, window_bounds = array<i64: 8, 8, 256>}, {transform_indices = @transform_1, window_bounds = array<i64: 8, 128>}, {pipeline_mode = #tpu.pipeline_mode<synchronous>, transform_indices = @transform_2, window_bounds = array<i64: 128, 256>}, {transform_indices = @transform_3, window_bounds = array<i64: 8, 8, 128>}]} {
    %c0_i32 = arith.constant 0 : i32
    %0 = arith.cmpi eq, %arg1, %c0_i32 : i32
    %1 = arith.extui %0 : i1 to i32
    %c0_i32_0 = arith.constant 0 : i32
    %2 = arith.cmpi ne, %1, %c0_i32_0 : i32
    scf.if %2 {
      %c0_62 = arith.constant 0 : index
      %c0_63 = arith.constant 0 : index
      %174 = vector.load %arg3[%c0_62, %c0_63] : memref<8x128xf32, #tpu.memory_space<vmem>>, vector<8x128xf32>
      %c0_64 = arith.constant 0 : index
      %c0_65 = arith.constant 0 : index
      %175 = vector.load %arg6[%c0_64, %c0_65] : memref<8x128xf32, #tpu.memory_space<vmem>>, vector<8x128xf32>
      tpu.vector_store %arg6[%c0_64, %c0_65], %174 {strides = array<i32>} : memref<8x128xf32, #tpu.memory_space<vmem>>, vector<8x128xf32>,
    } else {
    }
    %c0 = arith.constant 0 : index
    %c0_1 = arith.constant 0 : index
    %3 = vector.load %arg4[%c0, %c0_1] : memref<128x256xf32, #tpu.memory_space<vmem>>, vector<128x256xf32>
    %c0_2 = arith.constant 0 : index
    %c0_3 = arith.constant 0 : index
    %4 = vector.load %arg6[%c0_2, %c0_3] : memref<8x128xf32, #tpu.memory_space<vmem>>, vector<8x128xf32>
    %c0_i32_4 = arith.constant 0 : i32
    %5 = arith.index_cast %c0_i32_4 : i32 to index
    %c0_5 = arith.constant 0 : index
    %c0_6 = arith.constant 0 : index
    %6 = vector.load %arg2[%5, %c0_5, %c0_6] : memref<8x8x256xf32, #tpu.memory_space<vmem>>, vector<1x8x256xf32>
    %7 = vector.shape_cast %6 : vector<1x8x256xf32> to vector<8x256xf32>
    %cst = arith.constant dense<0.000000e+00> : vector<8x256xf32>
    %8 = tpu.matmul %4, %3, %cst {dimension_numbers = #tpu.dot_dimension_numbers<[1], [0], [0], [1], [0, 0, 1, 1], [], []>} : vector<8x128xf32>, vector<128x256xf32>, vector<8x256xf32> -> vector<8x256xf32>
    %9 = arith.addf %7, %8 : vector<8x256xf32>
    %10 = vector.extract_strided_slice %9 {offsets = [0, 0], sizes = [8, 128], strides = [1, 1]} : vector<8x256xf32> to vector<8x128xf32>
    %11 = arith.negf %10 : vector<8x128xf32>
    %12 = math.exp %11 : vector<8x128xf32>
    %cst_7 = arith.constant 1.000000e+00 : f32
    %13 = vector.broadcast %cst_7 : f32 to vector<8x128xf32>
    %14 = arith.addf %13, %12 : vector<8x128xf32>
    %15 = arith.divf %13, %14 : vector<8x128xf32>
    %16 = vector.extract_strided_slice %9 {offsets = [0, 128], sizes = [8, 128], strides = [1, 1]} : vector<8x256xf32> to vector<8x128xf32>
    %cst_8 = arith.constant 0.000000e+00 : f32
    %17 = vector.broadcast %cst_8 : f32 to vector<8x128xf32>
    %18 = arith.maximumf %16, %17 : vector<8x128xf32>
    %19 = arith.subf %18, %4 : vector<8x128xf32>
    %20 = arith.mulf %15, %19 : vector<8x128xf32>
    %21 = arith.addf %4, %20 : vector<8x128xf32>
    %22 = arith.index_cast %c0_i32_4 : i32 to index
    %c0_9 = arith.constant 0 : index
    %c0_10 = arith.constant 0 : index
    %23 = vector.load %arg5[%22, %c0_9, %c0_10] : memref<8x8x128xf32, #tpu.memory_space<vmem>>, vector<1x8x128xf32>
    %24 = vector.shape_cast %23 : vector<1x8x128xf32> to vector<8x128xf32>
    %25 = vector.shape_cast %21 : vector<8x128xf32> to vector<1x8x128xf32>
    tpu.vector_store %arg5[%22, %c0_9, %c0_10], %25 {strides = array<i32>} : memref<8x8x128xf32, #tpu.memory_space<vmem>>, vector<1x8x128xf32>,
    %c1_i32 = arith.constant 1 : i32
    %26 = arith.index_cast %c1_i32 : i32 to index
    %c0_11 = arith.constant 0 : index
    %c0_12 = arith.constant 0 : index
    %27 = vector.load %arg2[%26, %c0_11, %c0_12] : memref<8x8x256xf32, #tpu.memory_space<vmem>>, vector<1x8x256xf32>
    %28 = vector.shape_cast %27 : vector<1x8x256xf32> to vector<8x256xf32>
    %cst_13 = arith.constant dense<0.000000e+00> : vector<8x256xf32>
    %29 = tpu.matmul %21, %3, %cst_13 {dimension_numbers = #tpu.dot_dimension_numbers<[1], [0], [0], [1], [0, 0, 1, 1], [], []>} : vector<8x128xf32>, vector<128x256xf32>, vector<8x256xf32> -> vector<8x256xf32>
    %30 = arith.addf %28, %29 : vector<8x256xf32>
    %31 = vector.extract_strided_slice %30 {offsets = [0, 0], sizes = [8, 128], strides = [1, 1]} : vector<8x256xf32> to vector<8x128xf32>
    %32 = arith.negf %31 : vector<8x128xf32>
    %33 = math.exp %32 : vector<8x128xf32>
    %cst_14 = arith.constant 1.000000e+00 : f32
    %34 = vector.broadcast %cst_14 : f32 to vector<8x128xf32>
    %35 = arith.addf %34, %33 : vector<8x128xf32>
    %36 = arith.divf %34, %35 : vector<8x128xf32>
    %37 = vector.extract_strided_slice %30 {offsets = [0, 128], sizes = [8, 128], strides = [1, 1]} : vector<8x256xf32> to vector<8x128xf32>
    %cst_15 = arith.constant 0.000000e+00 : f32
    %38 = vector.broadcast %cst_15 : f32 to vector<8x128xf32>
    %39 = arith.maximumf %37, %38 : vector<8x128xf32>
    %40 = arith.subf %39, %21 : vector<8x128xf32>
    %41 = arith.mulf %36, %40 : vector<8x128xf32>
    %42 = arith.addf %21, %41 : vector<8x128xf32>
    %43 = arith.index_cast %c1_i32 : i32 to index
    %c0_16 = arith.constant 0 : index
    %c0_17 = arith.constant 0 : index
    %44 = vector.load %arg5[%43, %c0_16, %c0_17] : memref<8x8x128xf32, #tpu.memory_space<vmem>>, vector<1x8x128xf32>
    %45 = vector.shape_cast %44 : vector<1x8x128xf32> to vector<8x128xf32>
    %46 = vector.shape_cast %42 : vector<8x128xf32> to vector<1x8x128xf32>
    tpu.vector_store %arg5[%43, %c0_16, %c0_17], %46 {strides = array<i32>} : memref<8x8x128xf32, #tpu.memory_space<vmem>>, vector<1x8x128xf32>,
    %c2_i32 = arith.constant 2 : i32
    %47 = arith.index_cast %c2_i32 : i32 to index
    %c0_18 = arith.constant 0 : index
    %c0_19 = arith.constant 0 : index
    %48 = vector.load %arg2[%47, %c0_18, %c0_19] : memref<8x8x256xf32, #tpu.memory_space<vmem>>, vector<1x8x256xf32>
    %49 = vector.shape_cast %48 : vector<1x8x256xf32> to vector<8x256xf32>
    %cst_20 = arith.constant dense<0.000000e+00> : vector<8x256xf32>
    %50 = tpu.matmul %42, %3, %cst_20 {dimension_numbers = #tpu.dot_dimension_numbers<[1], [0], [0], [1], [0, 0, 1, 1], [], []>} : vector<8x128xf32>, vector<128x256xf32>, vector<8x256xf32> -> vector<8x256xf32>
    %51 = arith.addf %49, %50 : vector<8x256xf32>
    %52 = vector.extract_strided_slice %51 {offsets = [0, 0], sizes = [8, 128], strides = [1, 1]} : vector<8x256xf32> to vector<8x128xf32>
    %53 = arith.negf %52 : vector<8x128xf32>
    %54 = math.exp %53 : vector<8x128xf32>
    %cst_21 = arith.constant 1.000000e+00 : f32
    %55 = vector.broadcast %cst_21 : f32 to vector<8x128xf32>
    %56 = arith.addf %55, %54 : vector<8x128xf32>
    %57 = arith.divf %55, %56 : vector<8x128xf32>
    %58 = vector.extract_strided_slice %51 {offsets = [0, 128], sizes = [8, 128], strides = [1, 1]} : vector<8x256xf32> to vector<8x128xf32>
    %cst_22 = arith.constant 0.000000e+00 : f32
    %59 = vector.broadcast %cst_22 : f32 to vector<8x128xf32>
    %60 = arith.maximumf %58, %59 : vector<8x128xf32>
    %61 = arith.subf %60, %42 : vector<8x128xf32>
    %62 = arith.mulf %57, %61 : vector<8x128xf32>
    %63 = arith.addf %42, %62 : vector<8x128xf32>
    %64 = arith.index_cast %c2_i32 : i32 to index
    %c0_23 = arith.constant 0 : index
    %c0_24 = arith.constant 0 : index
    %65 = vector.load %arg5[%64, %c0_23, %c0_24] : memref<8x8x128xf32, #tpu.memory_space<vmem>>, vector<1x8x128xf32>
    %66 = vector.shape_cast %65 : vector<1x8x128xf32> to vector<8x128xf32>
    %67 = vector.shape_cast %63 : vector<8x128xf32> to vector<1x8x128xf32>
    tpu.vector_store %arg5[%64, %c0_23, %c0_24], %67 {strides = array<i32>} : memref<8x8x128xf32, #tpu.memory_space<vmem>>, vector<1x8x128xf32>,
    %c3_i32 = arith.constant 3 : i32
    %68 = arith.index_cast %c3_i32 : i32 to index
    %c0_25 = arith.constant 0 : index
    %c0_26 = arith.constant 0 : index
    %69 = vector.load %arg2[%68, %c0_25, %c0_26] : memref<8x8x256xf32, #tpu.memory_space<vmem>>, vector<1x8x256xf32>
    %70 = vector.shape_cast %69 : vector<1x8x256xf32> to vector<8x256xf32>
    %cst_27 = arith.constant dense<0.000000e+00> : vector<8x256xf32>
    %71 = tpu.matmul %63, %3, %cst_27 {dimension_numbers = #tpu.dot_dimension_numbers<[1], [0], [0], [1], [0, 0, 1, 1], [], []>} : vector<8x128xf32>, vector<128x256xf32>, vector<8x256xf32> -> vector<8x256xf32>
    %72 = arith.addf %70, %71 : vector<8x256xf32>
    %73 = vector.extract_strided_slice %72 {offsets = [0, 0], sizes = [8, 128], strides = [1, 1]} : vector<8x256xf32> to vector<8x128xf32>
    %74 = arith.negf %73 : vector<8x128xf32>
    %75 = math.exp %74 : vector<8x128xf32>
    %cst_28 = arith.constant 1.000000e+00 : f32
    %76 = vector.broadcast %cst_28 : f32 to vector<8x128xf32>
    %77 = arith.addf %76, %75 : vector<8x128xf32>
    %78 = arith.divf %76, %77 : vector<8x128xf32>
    %79 = vector.extract_strided_slice %72 {offsets = [0, 128], sizes = [8, 128], strides = [1, 1]} : vector<8x256xf32> to vector<8x128xf32>
    %cst_29 = arith.constant 0.000000e+00 : f32
    %80 = vector.broadcast %cst_29 : f32 to vector<8x128xf32>
    %81 = arith.maximumf %79, %80 : vector<8x128xf32>
    %82 = arith.subf %81, %63 : vector<8x128xf32>
    %83 = arith.mulf %78, %82 : vector<8x128xf32>
    %84 = arith.addf %63, %83 : vector<8x128xf32>
    %85 = arith.index_cast %c3_i32 : i32 to index
    %c0_30 = arith.constant 0 : index
    %c0_31 = arith.constant 0 : index
    %86 = vector.load %arg5[%85, %c0_30, %c0_31] : memref<8x8x128xf32, #tpu.memory_space<vmem>>, vector<1x8x128xf32>
    %87 = vector.shape_cast %86 : vector<1x8x128xf32> to vector<8x128xf32>
    %88 = vector.shape_cast %84 : vector<8x128xf32> to vector<1x8x128xf32>
    tpu.vector_store %arg5[%85, %c0_30, %c0_31], %88 {strides = array<i32>} : memref<8x8x128xf32, #tpu.memory_space<vmem>>, vector<1x8x128xf32>,
    %c4_i32 = arith.constant 4 : i32
    %89 = arith.index_cast %c4_i32 : i32 to index
    %c0_32 = arith.constant 0 : index
    %c0_33 = arith.constant 0 : index
    %90 = vector.load %arg2[%89, %c0_32, %c0_33] : memref<8x8x256xf32, #tpu.memory_space<vmem>>, vector<1x8x256xf32>
    %91 = vector.shape_cast %90 : vector<1x8x256xf32> to vector<8x256xf32>
    %cst_34 = arith.constant dense<0.000000e+00> : vector<8x256xf32>
    %92 = tpu.matmul %84, %3, %cst_34 {dimension_numbers = #tpu.dot_dimension_numbers<[1], [0], [0], [1], [0, 0, 1, 1], [], []>} : vector<8x128xf32>, vector<128x256xf32>, vector<8x256xf32> -> vector<8x256xf32>
    %93 = arith.addf %91, %92 : vector<8x256xf32>
    %94 = vector.extract_strided_slice %93 {offsets = [0, 0], sizes = [8, 128], strides = [1, 1]} : vector<8x256xf32> to vector<8x128xf32>
    %95 = arith.negf %94 : vector<8x128xf32>
    %96 = math.exp %95 : vector<8x128xf32>
    %cst_35 = arith.constant 1.000000e+00 : f32
    %97 = vector.broadcast %cst_35 : f32 to vector<8x128xf32>
    %98 = arith.addf %97, %96 : vector<8x128xf32>
    %99 = arith.divf %97, %98 : vector<8x128xf32>
    %100 = vector.extract_strided_slice %93 {offsets = [0, 128], sizes = [8, 128], strides = [1, 1]} : vector<8x256xf32> to vector<8x128xf32>
    %cst_36 = arith.constant 0.000000e+00 : f32
    %101 = vector.broadcast %cst_36 : f32 to vector<8x128xf32>
    %102 = arith.maximumf %100, %101 : vector<8x128xf32>
    %103 = arith.subf %102, %84 : vector<8x128xf32>
    %104 = arith.mulf %99, %103 : vector<8x128xf32>
    %105 = arith.addf %84, %104 : vector<8x128xf32>
    %106 = arith.index_cast %c4_i32 : i32 to index
    %c0_37 = arith.constant 0 : index
    %c0_38 = arith.constant 0 : index
    %107 = vector.load %arg5[%106, %c0_37, %c0_38] : memref<8x8x128xf32, #tpu.memory_space<vmem>>, vector<1x8x128xf32>
    %108 = vector.shape_cast %107 : vector<1x8x128xf32> to vector<8x128xf32>
    %109 = vector.shape_cast %105 : vector<8x128xf32> to vector<1x8x128xf32>
    tpu.vector_store %arg5[%106, %c0_37, %c0_38], %109 {strides = array<i32>} : memref<8x8x128xf32, #tpu.memory_space<vmem>>, vector<1x8x128xf32>,
    %c5_i32 = arith.constant 5 : i32
    %110 = arith.index_cast %c5_i32 : i32 to index
    %c0_39 = arith.constant 0 : index
    %c0_40 = arith.constant 0 : index
    %111 = vector.load %arg2[%110, %c0_39, %c0_40] : memref<8x8x256xf32, #tpu.memory_space<vmem>>, vector<1x8x256xf32>
    %112 = vector.shape_cast %111 : vector<1x8x256xf32> to vector<8x256xf32>
    %cst_41 = arith.constant dense<0.000000e+00> : vector<8x256xf32>
    %113 = tpu.matmul %105, %3, %cst_41 {dimension_numbers = #tpu.dot_dimension_numbers<[1], [0], [0], [1], [0, 0, 1, 1], [], []>} : vector<8x128xf32>, vector<128x256xf32>, vector<8x256xf32> -> vector<8x256xf32>
    %114 = arith.addf %112, %113 : vector<8x256xf32>
    %115 = vector.extract_strided_slice %114 {offsets = [0, 0], sizes = [8, 128], strides = [1, 1]} : vector<8x256xf32> to vector<8x128xf32>
    %116 = arith.negf %115 : vector<8x128xf32>
    %117 = math.exp %116 : vector<8x128xf32>
    %cst_42 = arith.constant 1.000000e+00 : f32
    %118 = vector.broadcast %cst_42 : f32 to vector<8x128xf32>
    %119 = arith.addf %118, %117 : vector<8x128xf32>
    %120 = arith.divf %118, %119 : vector<8x128xf32>
    %121 = vector.extract_strided_slice %114 {offsets = [0, 128], sizes = [8, 128], strides = [1, 1]} : vector<8x256xf32> to vector<8x128xf32>
    %cst_43 = arith.constant 0.000000e+00 : f32
    %122 = vector.broadcast %cst_43 : f32 to vector<8x128xf32>
    %123 = arith.maximumf %121, %122 : vector<8x128xf32>
    %124 = arith.subf %123, %105 : vector<8x128xf32>
    %125 = arith.mulf %120, %124 : vector<8x128xf32>
    %126 = arith.addf %105, %125 : vector<8x128xf32>
    %127 = arith.index_cast %c5_i32 : i32 to index
    %c0_44 = arith.constant 0 : index
    %c0_45 = arith.constant 0 : index
    %128 = vector.load %arg5[%127, %c0_44, %c0_45] : memref<8x8x128xf32, #tpu.memory_space<vmem>>, vector<1x8x128xf32>
    %129 = vector.shape_cast %128 : vector<1x8x128xf32> to vector<8x128xf32>
    %130 = vector.shape_cast %126 : vector<8x128xf32> to vector<1x8x128xf32>
    tpu.vector_store %arg5[%127, %c0_44, %c0_45], %130 {strides = array<i32>} : memref<8x8x128xf32, #tpu.memory_space<vmem>>, vector<1x8x128xf32>,
    %c6_i32 = arith.constant 6 : i32
    %131 = arith.index_cast %c6_i32 : i32 to index
    %c0_46 = arith.constant 0 : index
    %c0_47 = arith.constant 0 : index
    %132 = vector.load %arg2[%131, %c0_46, %c0_47] : memref<8x8x256xf32, #tpu.memory_space<vmem>>, vector<1x8x256xf32>
    %133 = vector.shape_cast %132 : vector<1x8x256xf32> to vector<8x256xf32>
    %cst_48 = arith.constant dense<0.000000e+00> : vector<8x256xf32>
    %134 = tpu.matmul %126, %3, %cst_48 {dimension_numbers = #tpu.dot_dimension_numbers<[1], [0], [0], [1], [0, 0, 1, 1], [], []>} : vector<8x128xf32>, vector<128x256xf32>, vector<8x256xf32> -> vector<8x256xf32>
    %135 = arith.addf %133, %134 : vector<8x256xf32>
    %136 = vector.extract_strided_slice %135 {offsets = [0, 0], sizes = [8, 128], strides = [1, 1]} : vector<8x256xf32> to vector<8x128xf32>
    %137 = arith.negf %136 : vector<8x128xf32>
    %138 = math.exp %137 : vector<8x128xf32>
    %cst_49 = arith.constant 1.000000e+00 : f32
    %139 = vector.broadcast %cst_49 : f32 to vector<8x128xf32>
    %140 = arith.addf %139, %138 : vector<8x128xf32>
    %141 = arith.divf %139, %140 : vector<8x128xf32>
    %142 = vector.extract_strided_slice %135 {offsets = [0, 128], sizes = [8, 128], strides = [1, 1]} : vector<8x256xf32> to vector<8x128xf32>
    %cst_50 = arith.constant 0.000000e+00 : f32
    %143 = vector.broadcast %cst_50 : f32 to vector<8x128xf32>
    %144 = arith.maximumf %142, %143 : vector<8x128xf32>
    %145 = arith.subf %144, %126 : vector<8x128xf32>
    %146 = arith.mulf %141, %145 : vector<8x128xf32>
    %147 = arith.addf %126, %146 : vector<8x128xf32>
    %148 = arith.index_cast %c6_i32 : i32 to index
    %c0_51 = arith.constant 0 : index
    %c0_52 = arith.constant 0 : index
    %149 = vector.load %arg5[%148, %c0_51, %c0_52] : memref<8x8x128xf32, #tpu.memory_space<vmem>>, vector<1x8x128xf32>
    %150 = vector.shape_cast %149 : vector<1x8x128xf32> to vector<8x128xf32>
    %151 = vector.shape_cast %147 : vector<8x128xf32> to vector<1x8x128xf32>
    tpu.vector_store %arg5[%148, %c0_51, %c0_52], %151 {strides = array<i32>} : memref<8x8x128xf32, #tpu.memory_space<vmem>>, vector<1x8x128xf32>,
    %c7_i32 = arith.constant 7 : i32
    %152 = arith.index_cast %c7_i32 : i32 to index
    %c0_53 = arith.constant 0 : index
    %c0_54 = arith.constant 0 : index
    %153 = vector.load %arg2[%152, %c0_53, %c0_54] : memref<8x8x256xf32, #tpu.memory_space<vmem>>, vector<1x8x256xf32>
    %154 = vector.shape_cast %153 : vector<1x8x256xf32> to vector<8x256xf32>
    %cst_55 = arith.constant dense<0.000000e+00> : vector<8x256xf32>
    %155 = tpu.matmul %147, %3, %cst_55 {dimension_numbers = #tpu.dot_dimension_numbers<[1], [0], [0], [1], [0, 0, 1, 1], [], []>} : vector<8x128xf32>, vector<128x256xf32>, vector<8x256xf32> -> vector<8x256xf32>
    %156 = arith.addf %154, %155 : vector<8x256xf32>
    %157 = vector.extract_strided_slice %156 {offsets = [0, 0], sizes = [8, 128], strides = [1, 1]} : vector<8x256xf32> to vector<8x128xf32>
    %158 = arith.negf %157 : vector<8x128xf32>
    %159 = math.exp %158 : vector<8x128xf32>
    %cst_56 = arith.constant 1.000000e+00 : f32
    %160 = vector.broadcast %cst_56 : f32 to vector<8x128xf32>
    %161 = arith.addf %160, %159 : vector<8x128xf32>
    %162 = arith.divf %160, %161 : vector<8x128xf32>
    %163 = vector.extract_strided_slice %156 {offsets = [0, 128], sizes = [8, 128], strides = [1, 1]} : vector<8x256xf32> to vector<8x128xf32>
    %cst_57 = arith.constant 0.000000e+00 : f32
    %164 = vector.broadcast %cst_57 : f32 to vector<8x128xf32>
    %165 = arith.maximumf %163, %164 : vector<8x128xf32>
    %166 = arith.subf %165, %147 : vector<8x128xf32>
    %167 = arith.mulf %162, %166 : vector<8x128xf32>
    %168 = arith.addf %147, %167 : vector<8x128xf32>
    %169 = arith.index_cast %c7_i32 : i32 to index
    %c0_58 = arith.constant 0 : index
    %c0_59 = arith.constant 0 : index
    %170 = vector.load %arg5[%169, %c0_58, %c0_59] : memref<8x8x128xf32, #tpu.memory_space<vmem>>, vector<1x8x128xf32>
    %171 = vector.shape_cast %170 : vector<1x8x128xf32> to vector<8x128xf32>
    %172 = vector.shape_cast %168 : vector<8x128xf32> to vector<1x8x128xf32>
    tpu.vector_store %arg5[%169, %c0_58, %c0_59], %172 {strides = array<i32>} : memref<8x8x128xf32, #tpu.memory_space<vmem>>, vector<1x8x128xf32>,
    %c8_i32 = arith.constant 8 : i32
    %c0_60 = arith.constant 0 : index
    %c0_61 = arith.constant 0 : index
    %173 = vector.load %arg6[%c0_60, %c0_61] : memref<8x128xf32, #tpu.memory_space<vmem>>, vector<8x128xf32>
    tpu.vector_store %arg6[%c0_60, %c0_61], %168 {strides = array<i32>} : memref<8x128xf32, #tpu.memory_space<vmem>>, vector<8x128xf32>,
    return
  }
  func.func @transform_0(%arg0: i32, %arg1: i32) -> (i32, i32, i32) {
    %c0_i32 = arith.constant 0 : i32
    %c0_i32_0 = arith.constant 0 : i32
    return %arg1, %arg0, %c0_i32 : i32, i32, i32
  }
  func.func @transform_1(%arg0: i32, %arg1: i32) -> (i32, i32) {
    %c0_i32 = arith.constant 0 : i32
    %c0_i32_0 = arith.constant 0 : i32
    return %arg0, %c0_i32 : i32, i32
  }
  func.func @transform_2(%arg0: i32, %arg1: i32) -> (i32, i32) {
    %c0_i32 = arith.constant 0 : i32
    %c0_i32_0 = arith.constant 0 : i32
    %c0_i32_1 = arith.constant 0 : i32
    return %c0_i32, %c0_i32_0 : i32, i32
  }
  func.func @transform_3(%arg0: i32, %arg1: i32) -> (i32, i32, i32) {
    %c0_i32 = arith.constant 0 : i32
    %c0_i32_0 = arith.constant 0 : i32
    return %arg1, %arg0, %c0_i32 : i32, i32, i32
  }
}

</mosaic_0001>

<bundles_post_ra>
// kernel: tpu_custom_call.1
= control target key start
LH: loop header
LB: loop body
LE: loop exit
PB: predicated region body
PF: predicated region fallthrough
CT: control target
= control target key end

     0   :  { %8 = vsyncpa [#allocation4], 0  ;;  %s2199_s0 = inlined_call_operand.hbm [shape: f32[16,8,256], index: 0, kind: input, shape index: {}]   ;;  %s2200_s1 = inlined_call_operand.hbm [shape: f32[8,128], index: 1, kind: input, shape index: {}]   ;;  %s2201_s2 = inlined_call_operand.hbm [shape: f32[128,256], index: 2, kind: input, shape index: {}]   ;;  %s2202_s3 = inlined_call_operand.hbm [shape: f32[16,8,128], index: 3, kind: output, shape index: {}]  }
   0x1   :  { %10 = vsyncpa [#allocation4 + $0x1], 0 }
   0x2   :  { %11 = vsyncpa [#allocation7], 0 }
   0x3   :  { %12 = vsyncpa [#allocation5], 0 }
   0x4   :  { %14 = vsyncpa [#allocation5 + $0x1], 0  ;;  %s1740_s12 = smov 0   ;;  %s1742_s13 = smov 0  }
   0x5   :  { %s1744_s14 = smov 0   ;;  %s1746_s15 = smov 0  }
   0x6   :  { %s1748_s16 = smov 0   ;;  %s1750_s17 = smov 0  }
   0x7 LB: > { %s1108_s18 = sadd.s32 4294967295, %s1709_s17   ;;  %s1109_s19 = sadd.s32 4294967294, %s1709_s17   ;;  %s1709_s17 = sphi %s1750_s17, %s20_s17   ;;  %s1705_s16 = sphi %s1748_s16, %s2230_s16   ;;  %s1701_s15 = sphi %s1746_s15, %s2229_s15   ;;  %s1697_s14 = sphi %s1744_s14, %s2228_s14   ;;  %s1693_s13 = sphi %s1742_s13, %s2227_s13   ;;  %s1689_s12 = sphi %s1740_s12, %s2226_s12  }
   0x8   : > { %p48_p0 = scmp.ne.s32.totalorder %s1697_s14, %s1693_s13  ;;  %p49_p1 = scmp.eq.s32.totalorder %s1709_s17, 0 }
   0x9   : > { %p54_p2 = scmp.ne.s32.totalorder %s1693_s13, %s1689_s12  ;;  %p1777_p3 = scmp.eq.s32.totalorder %s1108_s18, 0 }
   0xa   : > { %p127_p4 = scmp.eq.s32.totalorder %s1108_s18, 1  ;;  %p1781_p5 = por %p49_p1, %p48_p0 }
   0xb   : > { %s2209_s20 = scalar_select %p1777_p3, 1, 0 }
   0xc   : > { %p133_p6 = scmp.eq.s32.totalorder %s1109_s19, 1  ;;  %p1787_p7 = por %p1777_p3, %p54_p2 }
   0xd   : > { %p1791_p8 = por %p127_p4, %p48_p0  ;;  %p1110_p10 = scmp.ge.s32.totalorder %s1709_s17, 1 }
   0xe   : > { %s2211_s22 = scalar_select %p1787_p7, 1, 0 }
   0xf   : > { %s2212_s23 = scalar_select %p1791_p8, 1, 0 }
  0x10   : > { %p1795_p9 = por %p133_p6, %p54_p2  ;;  %p140_p11 = scmp.lt.s32.totalorder %s1709_s17, 3 }
  0x11   : > { %s1711_s26 = smov [#allocation6]   ;;  %p1446_p1 = scmp.lt.s32.totalorder %s1709_s17, 2 }
  0x12   : > { %s2213_s24 = scalar_select %p1795_p9, 1, 0 }
  0x13   : > { %p1802_p13 = pnand %p1110_p10, %p140_p11  ;;  %s155_s27 = sshll.u32 %s1711_s26, 4  ;;  %s156_s27 = int_to_ptr.vmem [resolvable:$true] %s155_s27 }
  0x14   : > { %p1811_p4 = pnand %p1446_p1, %p1781_p5  ;;  %s1712_s29 = smov [#allocation8]  }
  0x15   : > { %s2214_s25 = scalar_select %p1802_p13, 1, 0 }
  0x16   : > { %p1429_p0 = pneg %p1802_p13  ;;  %s165_s30 = sshll.u32 %s1712_s29, 4  ;;  %s1821_s30 = int_to_ptr.vmem [resolvable:$true] %s165_s30 }
  0x17   : > { %s2215_s28 = scalar_select %p1811_p4, 1, 0 }
  0x18   : > { %p1817_p2 = pnand %p1429_p0, %p1777_p3  ;;  %s1537_s7 = scalar_lea.hbm %s2200_s1, 128 }
  0x19   : > { %p1538_p5 = scmp.ne.s32.totalorder %s2200_s1, %s1537_s7  ;;  %p1544_p1 = scmp.lt.u32.totalorder %s1537_s7, %s2200_s1 }
  0x1a   : > { %p1539_p6 = pneg %p1817_p2 }
  0x1c   : > { %p1540_p10 = pnand %p1539_p6, %p1538_p5 }
  0x1e   : > { %p1541_p11 = pneg %p1540_p10 }
  0x20   : > { %p1546_p0 = pnand %p1544_p1, %p1541_p11 }
  0x22   : > { %1549 = shalt.err (!%p1546_p0)
}
  0x23   : > { %s1550_s18 = scalar_lea.vmem %s156_s27, 128  ;;  %p1558_p3 = scmp.lt.s32.totalorder %s156_s27, %s156_s27 }
  0x24   : > { %p1551_p12 = scmp.ne.s32.totalorder %s156_s27, %s1550_s18  ;;  %p1559_p7 = scmp.lt.s32.totalorder %s1550_s18, %s1550_s18 }
  0x26   : > { %p1553_p9 = pnand %p1551_p12, %p1539_p6  ;;  %p1560_p13 = por %p1559_p7, %p1558_p3 }
  0x28   : > { %p1554_p8 = pneg %p1553_p9 }
  0x2a   : > { %p1561_p4 = pnand %p1560_p13, %p1554_p8 }
  0x2c   : > { %1564 = shalt.err (!%p1561_p4)
}
  0x2d   : > { %1432 = dma.hbm_to_vmem [thread:$0]  (!%p1817_p2), %s2200_s1, 128, %s156_s27, [#allocation7]  }
  0x2e   : > { %s1565_s5 = scalar_lea.hbm %s2201_s2, 4096 }
  0x2f   : > { %p1566_p9 = scmp.ne.s32.totalorder %s2201_s2, %s1565_s5  ;;  %p1572_p8 = scmp.lt.u32.totalorder %s1565_s5, %s2201_s2 }
  0x31   : > { %p1568_p3 = pnand %p1566_p9, %p1539_p6 }
  0x33   : > { %p1569_p7 = pneg %p1568_p3 }
  0x35   : > { %p1574_p12 = pnand %p1572_p8, %p1569_p7 }
  0x37   : > { %1577 = shalt.err (!%p1574_p12)
}
  0x38   : > { %s1578_s27 = scalar_lea.vmem %s1821_s30, 4096  ;;  %p1586_p10 = scmp.lt.s32.totalorder %s1821_s30, %s1821_s30 }
  0x39   : > { %p1579_p13 = scmp.ne.s32.totalorder %s1821_s30, %s1578_s27  ;;  %p1587_p11 = scmp.lt.s32.totalorder %s1578_s27, %s1578_s27 }
  0x3b   : > { %p1581_p4 = pnand %p1579_p13, %p1539_p6  ;;  %p1588_p1 = por %p1587_p11, %p1586_p10 }
  0x3d   : > { %p1582_p5 = pneg %p1581_p4 }
  0x3f   : > { %p1589_p0 = pnand %p1588_p1, %p1582_p5 }
  0x41   : > { %1592 = shalt.err (!%p1589_p0)
}
  0x42   : > { %s1713_s10 = smov 256   ;;  %s1714_s11 = smov 16  }
  0x43   : > { %1435 = dma.hbm_to_vmem [thread:$0]  (!%p1817_p2), %s2201_s2, 4096, %s1821_s30, [#allocation7], %s1713_s10, %s1713_s10, %s1714_s11  }
  0x44   : > { %s179_s21 = sand.u32 1, %s1697_s14   ;;  %s29_s26 = sadd.s32 1, %s1705_s16 }
  0x45   : > { %s1114_s29 = sshll.u32 %s179_s21, 7  ;;  %p30_p6 = scmp.ge.s32.totalorder %s29_s26, 2 }
  0x46   : > { %s1159_s5 = sshll.u32 %s1705_s16, 11  ;;  %s183_s6 = scalar_lea.vmem [#allocation3], %s1114_s29 }
  0x47   : > { %s193_s7 = sshll.u32 %s183_s6, 4  ;;  %s2232_s26 = smov (%p30_p6, %s29_s26), 0  ;;  %s1883_s7 = int_to_ptr.vmem [resolvable:$true] %s193_s7 }
  0x48   : > { %s1881_s9 = scalar_lea.hbm %s2199_s0, %s1159_s5  ;;  %s36_s27 = ssub.s32 %s1705_s16, %s2232_s26 }
  0x49   : > { %p1888_p2 = scmp.eq.s32.totalorder %s36_s27, 0  ;;  %s1892_s19 = scalar_lea.sflag [#allocation4], %s179_s21 }
  0x4a   : > { %s1593_s29 = scalar_lea.hbm %s1881_s9, 2048  ;;  %p2218_p3 = scmp.ne.s32.totalorder %s2215_s28, 0 }
  0x4b   : > { %p1594_p9 = scmp.ne.s32.totalorder %s1881_s9, %s1593_s29  ;;  %s1598_s8 = scalar_lea.hbm %s2199_s0, 4096 }
  0x4c   : > { %p1595_p7 = pneg %p2218_p3  ;;  %p1599_p13 = scmp.lt.u32.totalorder %s1881_s9, %s2199_s0 }
  0x4d   : > { %p1600_p4 = scmp.lt.u32.totalorder %s1598_s8, %s1593_s29  ;;  %p1602_p10 = scmp.lt.u32.totalorder %s1593_s29, %s1881_s9 }
  0x4e   : > { %p1596_p8 = pnand %p1595_p7, %p1594_p9 }
  0x4f   : > { %p1601_p5 = por %p1600_p4, %p1599_p13 }
  0x50   : > { %p1597_p12 = pneg %p1596_p8 }
  0x51   : > { %p1603_p11 = por %p1602_p10, %p1601_p5 }
  0x53   : > { %p1604_p1 = pnand %p1603_p11, %p1597_p12 }
  0x55   : > { %1607 = shalt.err (!%p1604_p1)
}
  0x56   : > { %s1608_s21 = scalar_lea.vmem %s1883_s7, 2048  ;;  %s1715_s27 = smov [#allocation3]  }
  0x57   : > { %p1609_p0 = scmp.ne.s32.totalorder %s1883_s7, %s1608_s21  ;;  %s1613_s5 = sshll.u32 %s1715_s27, 4  ;;  %s1614_s5 = int_to_ptr.vmem [resolvable:$false] %s1613_s5 }
  0x58   : > { %s1615_s30 = scalar_lea.vmem %s1614_s5, 4096  ;;  %p1616_p8 = scmp.lt.s32.totalorder %s1883_s7, %s1614_s5 }
  0x59   : > { %p1611_p6 = pnand %p1609_p0, %p1595_p7  ;;  %p1617_p13 = scmp.lt.s32.totalorder %s1615_s30, %s1608_s21 }
  0x5b   : > { %p1612_p9 = pneg %p1611_p6  ;;  %p1618_p4 = por %p1617_p13, %p1616_p8 }
  0x5d   : > { %p1619_p5 = pnand %p1618_p4, %p1612_p9 }
  0x5f   : > { %1622 = shalt.err (!%p1619_p5)
}
  0x60   : > { %1439 = dma.hbm_to_vmem [thread:$0]  (!%p2218_p3), %s1881_s9, 2048, %s1883_s7, %s1892_s19, %s1713_s10, %s1713_s10, %s1714_s11  }
  0x61   : > { %s2219_s29 = sadd.s32 1, %s1697_s14  ;;  %p2220_p7 = scmp.ne.s32.totalorder %s2214_s25, 0 }
  0x62   : > { %s1928_s6 = scalar_select %p1888_p2, %s1697_s14, %s2219_s29  }
  0x63   : > { %205 = sbr.rel (%p2220_p7) target bundleno = 2121 (0x849), region = 32  ;;  %s1933_s28 = sand.u32 (!%p2220_p7), 1, %s1693_s13  }
  0x64   : > { %s1119_s8 = sshll.u32 (!%p2220_p7), %s1933_s28, 7  ;;  %s208_s4 = scalar_lea.sflag (!%p2220_p7), [#allocation4], %s1933_s28 }
  0x65   : > { %s1937_s21 = scalar_lea.vmem (!%p2220_p7), [#allocation3], %s1119_s8  ;;  %p2221_p12 = scmp.ne.s32.totalorder (!%p2220_p7), %s2211_s22, 0 }
  0x6a   : > { %1676 = dma.done.wait (%p2221_p12), %s208_s4, 2048  }
  0x6b   : > { %1678 = vsyncadd (%p2221_p12), %s208_s4, 4294965248  ;;  %p2222_p2 = scmp.ne.s32.totalorder %s2209_s20, 0 }
  0x6d   : > { %1680 = dma.done.wait (%p2222_p2), [#allocation7], 4224  }
  0x6e   : > { %1682 = vsyncadd (%p2222_p2), [#allocation7], 4294963072  ;;  %s1122_s25 = sshll.u32 %s1933_s28, 6  ;;  %p1123_p3 = scmp.ne.s32.totalorder %s1701_s15, 0 }
  0x6f   : > { %s1948_s10 = scalar_lea.vmem [#allocation9], %s1122_s25  ;;  %v248_v0 = vld [vmem:[#allocation6] sm:$0xff] (!%p1123_p3) }
  0x70   : > { %247 = sbr.rel (%p1123_p3) target bundleno = 119 (0x77), region = 48  ;;  %249 = vst [vmem:[#allocation2] sm:$0xff] (!%p1123_p3), %v248_v0 }
  0x77 PF: > { %v251_v1 = vld [vmem:[#allocation8 + $0x8] sm:$0xff]  ;;  %v253_v2 = vld [vmem:[#allocation8 + $0x18] sm:$0xff]  ;;  %v250_v3 = vld [vmem:[#allocation8] sm:$0xff]  ;;  %v1716_v8 = vmov 0.0   ;;  %s1160_s20 = sshll.u32 %s1701_s15, 10  ;;  %s1001_s22 = sshll.u32 %s1948_s10, 4  ;;  %s2149_s22 = int_to_ptr.vmem [resolvable:$true] %s1001_s22 }
  0x78   : > { %v1951_v4 = vpack.c.bf16 %v253_v2, %v251_v1  ;;  %v252_v5 = vld [vmem:[#allocation8 + $0x10] sm:$0xff]  ;;  %v255_v6 = vld [vmem:[#allocation8 + $0x28] sm:$0xff]  ;;  %v257_v7 = vld [vmem:[#allocation8 + $0x38] sm:$0xff]  ;;  %349 = vmatprep.mubr.f32.mxu0 %v1716_v8  ;;  %436 = vmatprep.mubr.f32.mxu1 %v1716_v8  ;;  %s2147_s9 = scalar_lea.hbm %s2202_s3, %s1160_s20  ;;  %s987_s18 = scalar_lea.sflag [#allocation5], %s1933_s28 }
  0x79   : > { %v1955_v9 = vpack.c.bf16 %v252_v5, %v250_v3  ;;  %v1957_v10 = vpack.c.bf16 %v257_v7, %v255_v6  ;;  %v254_v11 = vld [vmem:[#allocation8 + $0x20] sm:$0xff]  ;;  %v256_v12 = vld [vmem:[#allocation8 + $0x30] sm:$0xff]  ;;  %v259_v13 = vld [vmem:[#allocation8 + $0x48] sm:$0xff]  ;;  %s1623_s19 = scalar_lea.vmem %s2149_s22, 1024  ;;  %p2223_p11 = scmp.ne.s32.totalorder %s2212_s23, 0 }
  0x7a   : > { %1162 = vmatprep.subr.bf16.mxu0 %v1951_v4  ;;  %v261_v14 = vld [vmem:[#allocation8 + $0x58] sm:$0xff]  ;;  %1194 = vmatprep.subr.bf16.mxu1 %v1951_v4  ;;  %v1962_v15 = vpack.c.bf16 %v256_v12, %v254_v11  ;;  %v258_v17 = vld [vmem:[#allocation8 + $0x40] sm:$0xff]  ;;  %v260_v18 = vld [vmem:[#allocation8 + $0x50] sm:$0xff]  ;;  %p1624_p10 = scmp.ne.s32.totalorder %s2149_s22, %s1623_s19  ;;  %s1717_s15 = smov [#allocation9]  }
  0x7b   : > { %1164 = vmatpush1.bf16.msra.mxu0 %v1955_v9  ;;  %1196 = vmatpush1.bf16.msra.mxu1 %v1955_v9  ;;  %v1966_v16 = vpack.c.bf16 %v261_v14, %v259_v13  ;;  %v263_v19 = vld [vmem:[#allocation8 + $0x68] sm:$0xff]  ;;  %v265_v20 = vld [vmem:[#allocation8 + $0x78] sm:$0xff]  ;;  %v1970_v21 = vpack.c.bf16 %v260_v18, %v258_v17  ;;  %v262_v23 = vld [vmem:[#allocation8 + $0x60] sm:$0xff]  ;;  %s1627_s27 = sshll.u32 %s1717_s15, 4  ;;  %s1628_s27 = int_to_ptr.vmem [resolvable:$false] %s1627_s27 }
  0x7c   : > { %1166 = vmatprep.subr.bf16.mxu0 %v1957_v10  ;;  %1198 = vmatprep.subr.bf16.mxu1 %v1957_v10  ;;  %v1974_v22 = vpack.c.bf16 %v265_v20, %v263_v19  ;;  %v264_v24 = vld [vmem:[#allocation8 + $0x70] sm:$0xff]  ;;  %v267_v25 = vld [vmem:[#allocation8 + $0x88] sm:$0xff]  ;;  %v269_v26 = vld [vmem:[#allocation8 + $0x98] sm:$0xff]  ;;  %p1625_p1 = pnand %p1624_p10, %p2223_p11  ;;  %s1629_s5 = scalar_lea.vmem %s1628_s27, 2048 }
  0x7d   : > { %v1978_v27 = vpack.c.bf16 %v264_v24, %v262_v23  ;;  %v1982_v28 = vpack.c.bf16 %v269_v26, %v267_v25  ;;  %v266_v29 = vld [vmem:[#allocation8 + $0x80] sm:$0xff]  ;;  %v268_v30 = vld [vmem:[#allocation8 + $0x90] sm:$0xff]  ;;  %v271_v31 = vld [vmem:[#allocation8 + $0xa8] sm:$0xff]  ;;  %p1630_p6 = scmp.lt.s32.totalorder %s2149_s22, %s1628_s27  ;;  %p1631_p9 = scmp.lt.s32.totalorder %s1629_s5, %s1623_s19 }
  0x7e   : > { %v273_v32 = vld [vmem:[#allocation8 + $0xb8] sm:$0xff]  ;;  %v1986_v33 = vpack.c.bf16 %v268_v30, %v266_v29  ;;  %v270_v35 = vld [vmem:[#allocation8 + $0xa0] sm:$0xff]  ;;  %v272_v36 = vld [vmem:[#allocation8 + $0xb0] sm:$0xff]  ;;  %p1626_p0 = pneg %p1625_p1 }
  0x7f   : > { %1168 = vmatpush1.bf16.msra.mxu0 %v1962_v15  ;;  %1200 = vmatpush1.bf16.msra.mxu1 %v1962_v15  ;;  %v1990_v34 = vpack.c.bf16 %v273_v32, %v271_v31  ;;  %v275_v37 = vld [vmem:[#allocation8 + $0xc8] sm:$0xff]  ;;  %v277_v38 = vld [vmem:[#allocation8 + $0xd8] sm:$0xff]  ;;  %v1994_v39 = vpack.c.bf16 %v272_v36, %v270_v35  ;;  %v274_v41 = vld [vmem:[#allocation8 + $0xc0] sm:$0xff]  ;;  %p1632_p8 = por %p1631_p9, %p1630_p6 }
  0x80   : > { %1170 = vmatprep.subr.bf16.mxu0 %v1966_v16  ;;  %1202 = vmatprep.subr.bf16.mxu1 %v1966_v16  ;;  %v1998_v40 = vpack.c.bf16 %v277_v38, %v275_v37  ;;  %v276_v42 = vld [vmem:[#allocation8 + $0xd0] sm:$0xff]  ;;  %v279_v43 = vld [vmem:[#allocation8 + $0xe8] sm:$0xff]  ;;  %v281_v44 = vld [vmem:[#allocation8 + $0xf8] sm:$0xff] }
  0x81   : > { %v2002_v45 = vpack.c.bf16 %v276_v42, %v274_v41  ;;  %v2006_v46 = vpack.c.bf16 %v281_v44, %v279_v43  ;;  %v278_v47 = vld [vmem:[#allocation8 + $0xe0] sm:$0xff]  ;;  %v280_v48 = vld [vmem:[#allocation8 + $0xf0] sm:$0xff]  ;;  %v283_v51 = vld [vmem:[%s1937_s21] sm:$0xff]  ;;  %p1633_p13 = pnand %p1632_p8, %p1626_p0 }
  0x82   : > { %v2010_v49 = vpack.c.bf16 %v280_v48, %v278_v47  ;;  %v282_v50 = vld [vmem:[#allocation2] sm:$0xff]  ;;  %v284_v58 = vld [vmem:[%s1937_s21 + $0x8] sm:$0xff]  ;;  %v1125_v1 = vld [vmem:[%s1937_s21 + $0x10] sm:$0xff] }
  0x83   : > { %1172 = vmatpush1.bf16.msra.mxu0 %v1970_v21  ;;  %1204 = vmatpush1.bf16.msra.mxu1 %v1970_v21  ;;  %v1126_v12 = vld [vmem:[%s1937_s21 + $0x18] sm:$0xff]  ;;  %v1129_v23 = vld [vmem:[%s1937_s21 + $0x20] sm:$0xff]  ;;  %v1130_v32 = vld [vmem:[%s1937_s21 + $0x28] sm:$0xff] }
  0x84   : > { %1174 = vmatprep.subr.bf16.mxu0 %v1974_v22  ;;  %1206 = vmatprep.subr.bf16.mxu1 %v1974_v22  ;;  %v1133_v43 = vld [vmem:[%s1937_s21 + $0x30] sm:$0xff] }
  0x87   : > { %1176 = vmatpush1.bf16.msra.mxu0 %v1978_v27  ;;  %1208 = vmatpush1.bf16.msra.mxu1 %v1978_v27 }
  0x88   : > { %1178 = vmatprep.subr.bf16.mxu0 %v1982_v28  ;;  %1210 = vmatprep.subr.bf16.mxu1 %v1982_v28 }
  0x8b   : > { %1180 = vmatpush1.bf16.msra.mxu0 %v1986_v33  ;;  %1212 = vmatpush1.bf16.msra.mxu1 %v1986_v33 }
  0x8c   : > { %1182 = vmatprep.subr.bf16.mxu0 %v1990_v34  ;;  %1214 = vmatprep.subr.bf16.mxu1 %v1990_v34 }
  0x8f   : > { %1184 = vmatpush1.bf16.msra.mxu0 %v1994_v39  ;;  %1216 = vmatpush1.bf16.msra.mxu1 %v1994_v39 }
  0x90   : > { %1186 = vmatprep.subr.bf16.mxu0 %v1998_v40  ;;  %1218 = vmatprep.subr.bf16.mxu1 %v1998_v40 }
  0x93   : > { %1188 = vmatpush1.bf16.msra.mxu0 %v2002_v45  ;;  %1220 = vmatpush1.bf16.msra.mxu1 %v2002_v45 }
  0x94   : > { %1190 = vmatprep.subr.bf16.mxu0 %v2006_v46  ;;  %1222 = vmatprep.subr.bf16.mxu1 %v2006_v46 }
  0x97   : > { %1192 = vmatpush1.bf16.msra.mxu0 %v2010_v49  ;;  %1224 = vmatpush1.bf16.msra.mxu1 %v2010_v49 }
  0x98   : > { %1226 = vmatprep.subr.bf16.mxu0 %v1951_v4  ;;  %1258 = vmatprep.subr.bf16.mxu1 %v1951_v4 }
  0x9a   : > { %350 = vmatmul.mubr.f32.vlgmr.msra.gmra.mrb[0].mxu0 %v282_v50 }
  0x9b   : > { %1228 = vmatpush1.bf16.msra.mxu0 %v1955_v9  ;;  %524 = vmatprep.mubr.f32.mxu0 %v1716_v8 }
  0x9c   : > { %1230 = vmatprep.subr.bf16.mxu0 %v1957_v10 }
  0x9f   : > { %1232 = vmatpush1.bf16.msra.mxu0 %v1962_v15 }
  0xa0   : > { %1234 = vmatprep.subr.bf16.mxu0 %v1966_v16 }
  0xa3   : > { %1236 = vmatpush1.bf16.msra.mxu0 %v1970_v21 }
  0xa4   : > { %1238 = vmatprep.subr.bf16.mxu0 %v1974_v22 }
  0xa7   : > { %1240 = vmatpush1.bf16.msra.mxu0 %v1978_v27 }
  0xa8   : > { %1242 = vmatprep.subr.bf16.mxu0 %v1982_v28 }
  0xab   : > { %1244 = vmatpush1.bf16.msra.mxu0 %v1986_v33 }
  0xac   : > { %1246 = vmatprep.subr.bf16.mxu0 %v1990_v34 }
  0xaf   : > { %1248 = vmatpush1.bf16.msra.mxu0 %v1994_v39 }
  0xb0   : > { %1250 = vmatprep.subr.bf16.mxu0 %v1998_v40 }
  0xb3   : > { %1252 = vmatpush1.bf16.msra.mxu0 %v2002_v45 }
  0xb4   : > { %1254 = vmatprep.subr.bf16.mxu0 %v2006_v46 }
  0xb7   : > { %1256 = vmatpush1.bf16.msra.mxu0 %v2010_v49 }
  0xb8   : > { %1290 = vmatprep.subr.bf16.mxu0 %v1951_v4 }
 0x16d   : > { %v351_v52 = vpop.f32.mrb[0].mxu0 }
 0x16e   : > { %v356_v53 = vadd.f32 %v351_v52, %v283_v51  ;;  %v353_v54 = vpop.f32.mrb[1].mxu0 }
 0x16f   : > { %v357_v59 = vadd.f32 %v353_v54, %v284_v58 }
 0x170   : > { %v1124_v55 = vmul.f32 -1.442695, %v356_v53  ;;  %v1134_v53 = vld [vmem:[%s1937_s21 + $0x38] sm:$0xff] }
 0x171   : > { %v364_v60 = vmax.f32 %v357_v59, 0.0 }
 0x172   : > { %1505 = vpow2.f32 %v1124_v55 }
 0x173   : > { %v365_v61 = vsub.f32 %v364_v60, %v282_v50 }
 0x17c   : > { %v1506_v56 = vpop.eup %1505 }
 0x17d   : > { %v361_v57 = vadd.f32 1.0, %v1506_v56 }
 0x17f   : > { %1507 = vrcp.f32 %v361_v57 }
 0x189   : > { %v1508_v62 = vpop.eup %1507 }
 0x18a   : > { %v366_v63 = vmul.f32 %v1508_v62, %v365_v61 }
 0x18c   : > { %v367_v0 = vadd.f32 %v366_v63, %v282_v50 }
 0x18e   : > { %368 = vst [vmem:[%s1948_s10] sm:$0xff] %v367_v0  ;;  %437 = vmatmul.mubr.f32.vlgmr.msra.gmra.mrb[0].mxu1 %v367_v0 }
 0x18f   : > { %1260 = vmatpush1.bf16.msra.mxu1 %v1955_v9  ;;  %612 = vmatprep.mubr.f32.mxu1 %v1716_v8 }
 0x190   : > { %1262 = vmatprep.subr.bf16.mxu1 %v1957_v10 }
 0x193   : > { %1264 = vmatpush1.bf16.msra.mxu1 %v1962_v15 }
 0x194   : > { %1266 = vmatprep.subr.bf16.mxu1 %v1966_v16 }
 0x197   : > { %1268 = vmatpush1.bf16.msra.mxu1 %v1970_v21 }
 0x198   : > { %1270 = vmatprep.subr.bf16.mxu1 %v1974_v22 }
 0x19b   : > { %1272 = vmatpush1.bf16.msra.mxu1 %v1978_v27 }
 0x19c   : > { %1274 = vmatprep.subr.bf16.mxu1 %v1982_v28 }
 0x19f   : > { %1276 = vmatpush1.bf16.msra.mxu1 %v1986_v33 }
 0x1a0   : > { %1278 = vmatprep.subr.bf16.mxu1 %v1990_v34 }
 0x1a3   : > { %1280 = vmatpush1.bf16.msra.mxu1 %v1994_v39 }
 0x1a4   : > { %1282 = vmatprep.subr.bf16.mxu1 %v1998_v40 }
 0x1a7   : > { %1284 = vmatpush1.bf16.msra.mxu1 %v2002_v45 }
 0x1a8   : > { %1286 = vmatprep.subr.bf16.mxu1 %v2006_v46 }
 0x1ab   : > { %1288 = vmatpush1.bf16.msra.mxu1 %v2010_v49 }
 0x1ac   : > { %1322 = vmatprep.subr.bf16.mxu1 %v1951_v4 }
 0x261   : > { %v438_v2 = vpop.f32.mrb[0].mxu1 }
 0x262   : > { %v443_v3 = vadd.f32 %v1125_v1, %v438_v2  ;;  %v440_v5 = vpop.f32.mrb[1].mxu1  ;;  %v1138_v2 = vld [vmem:[%s1937_s21 + $0x48] sm:$0xff] }
 0x263   : > { %v444_v13 = vadd.f32 %v1126_v12, %v440_v5 }
 0x264   : > { %v1127_v6 = vmul.f32 -1.442695, %v443_v3 }
 0x265   : > { %v451_v14 = vmax.f32 %v444_v13, 0.0 }
 0x266   : > { %1509 = vpow2.f32 %v1127_v6 }
 0x267   : > { %v452_v17 = vsub.f32 %v451_v14, %v367_v0 }
 0x270   : > { %v1510_v7 = vpop.eup %1509 }
 0x271   : > { %v448_v11 = vadd.f32 1.0, %v1510_v7 }
 0x273   : > { %1511 = vrcp.f32 %v448_v11 }
 0x27d   : > { %v1512_v18 = vpop.eup %1511 }
 0x27e   : > { %v453_v19 = vmul.f32 %v1512_v18, %v452_v17 }
 0x280   : > { %v454_v20 = vadd.f32 %v453_v19, %v367_v0 }
 0x282   : > { %1128 = vst [vmem:[%s1948_s10 + $0x8] sm:$0xff] %v454_v20  ;;  %525 = vmatmul.mubr.f32.vlgmr.msra.gmra.mrb[2].mxu0 %v454_v20 }
 0x283   : > { %1292 = vmatpush1.bf16.msra.mxu0 %v1955_v9  ;;  %700 = vmatprep.mubr.f32.mxu0 %v1716_v8 }
 0x284   : > { %1294 = vmatprep.subr.bf16.mxu0 %v1957_v10 }
 0x287   : > { %1296 = vmatpush1.bf16.msra.mxu0 %v1962_v15 }
 0x288   : > { %1298 = vmatprep.subr.bf16.mxu0 %v1966_v16 }
 0x28b   : > { %1300 = vmatpush1.bf16.msra.mxu0 %v1970_v21 }
 0x28c   : > { %1302 = vmatprep.subr.bf16.mxu0 %v1974_v22 }
 0x28f   : > { %1304 = vmatpush1.bf16.msra.mxu0 %v1978_v27 }
 0x290   : > { %1306 = vmatprep.subr.bf16.mxu0 %v1982_v28 }
 0x293   : > { %1308 = vmatpush1.bf16.msra.mxu0 %v1986_v33 }
 0x294   : > { %1310 = vmatprep.subr.bf16.mxu0 %v1990_v34 }
 0x297   : > { %1312 = vmatpush1.bf16.msra.mxu0 %v1994_v39 }
 0x298   : > { %1314 = vmatprep.subr.bf16.mxu0 %v1998_v40 }
 0x29b   : > { %1316 = vmatpush1.bf16.msra.mxu0 %v2002_v45 }
 0x29c   : > { %1318 = vmatprep.subr.bf16.mxu0 %v2006_v46 }
 0x29f   : > { %1320 = vmatpush1.bf16.msra.mxu0 %v2010_v49 }
 0x2a0   : > { %1354 = vmatprep.subr.bf16.mxu0 %v1951_v4 }
 0x355   : > { %v526_v24 = vpop.f32.mrb[2].mxu0 }
 0x356   : > { %v531_v25 = vadd.f32 %v1129_v23, %v526_v24  ;;  %v528_v26 = vpop.f32.mrb[3].mxu0 }
 0x357   : > { %v532_v35 = vadd.f32 %v1130_v32, %v528_v26 }
 0x358   : > { %v1131_v29 = vmul.f32 -1.442695, %v531_v25 }
 0x359   : > { %v539_v36 = vmax.f32 %v532_v35, 0.0 }
 0x35a   : > { %1513 = vpow2.f32 %v1131_v29 }
 0x35b   : > { %v540_v37 = vsub.f32 %v539_v36, %v454_v20 }
 0x364   : > { %v1514_v30 = vpop.eup %1513 }
 0x365   : > { %v536_v31 = vadd.f32 1.0, %v1514_v30 }
 0x367   : > { %1515 = vrcp.f32 %v536_v31  ;;  %v1149_v31 = vld [vmem:[%s1937_s21 + $0x70] sm:$0xff] }
 0x371   : > { %v1516_v38 = vpop.eup %1515 }
 0x372   : > { %v541_v41 = vmul.f32 %v1516_v38, %v540_v37 }
 0x374   : > { %v542_v42 = vadd.f32 %v541_v41, %v454_v20  ;;  %v1146_v20 = vld [vmem:[%s1937_s21 + $0x68] sm:$0xff] }
 0x376   : > { %1132 = vst [vmem:[%s1948_s10 + $0x10] sm:$0xff] %v542_v42  ;;  %613 = vmatmul.mubr.f32.vlgmr.msra.gmra.mrb[2].mxu1 %v542_v42 }
 0x377   : > { %1324 = vmatpush1.bf16.msra.mxu1 %v1955_v9  ;;  %788 = vmatprep.mubr.f32.mxu1 %v1716_v8 }
 0x378   : > { %1326 = vmatprep.subr.bf16.mxu1 %v1957_v10 }
 0x37b   : > { %1328 = vmatpush1.bf16.msra.mxu1 %v1962_v15 }
 0x37c   : > { %1330 = vmatprep.subr.bf16.mxu1 %v1966_v16 }
 0x37f   : > { %1332 = vmatpush1.bf16.msra.mxu1 %v1970_v21 }
 0x380   : > { %1334 = vmatprep.subr.bf16.mxu1 %v1974_v22 }
 0x383   : > { %1336 = vmatpush1.bf16.msra.mxu1 %v1978_v27 }
 0x384   : > { %1338 = vmatprep.subr.bf16.mxu1 %v1982_v28 }
 0x387   : > { %1340 = vmatpush1.bf16.msra.mxu1 %v1986_v33 }
 0x388   : > { %1342 = vmatprep.subr.bf16.mxu1 %v1990_v34 }
 0x38b   : > { %1344 = vmatpush1.bf16.msra.mxu1 %v1994_v39 }
 0x38c   : > { %1346 = vmatprep.subr.bf16.mxu1 %v1998_v40 }
 0x38f   : > { %1348 = vmatpush1.bf16.msra.mxu1 %v2002_v45 }
 0x390   : > { %1350 = vmatprep.subr.bf16.mxu1 %v2006_v46 }
 0x393   : > { %1352 = vmatpush1.bf16.msra.mxu1 %v2010_v49 }
 0x394   : > { %1386 = vmatprep.subr.bf16.mxu1 %v1951_v4  ;;  %v1137_v4 = vld [vmem:[%s1937_s21 + $0x40] sm:$0xff] }
 0x449   : > { %v614_v44 = vpop.f32.mrb[2].mxu1 }
 0x44a   : > { %v619_v47 = vadd.f32 %v1133_v43, %v614_v44  ;;  %v616_v48 = vpop.f32.mrb[3].mxu1 }
 0x44b   : > { %v620_v54 = vadd.f32 %v1134_v53, %v616_v48 }
 0x44c   : > { %v1135_v50 = vmul.f32 -1.442695, %v619_v47 }
 0x44d   : > { %v627_v55 = vmax.f32 %v620_v54, 0.0 }
 0x44e   : > { %1517 = vpow2.f32 %v1135_v50 }
 0x44f   : > { %v628_v56 = vsub.f32 %v627_v55, %v542_v42 }
 0x458   : > { %v1518_v51 = vpop.eup %1517 }
 0x459   : > { %v624_v52 = vadd.f32 1.0, %v1518_v51 }
 0x45b   : > { %1519 = vrcp.f32 %v624_v52 }
 0x465   : > { %v1520_v57 = vpop.eup %1519 }
 0x466   : > { %v629_v58 = vmul.f32 %v1520_v57, %v628_v56 }
 0x468   : > { %v630_v59 = vadd.f32 %v629_v58, %v542_v42  ;;  %v1150_v42 = vld [vmem:[%s1937_s21 + $0x78] sm:$0xff] }
 0x46a   : > { %1136 = vst [vmem:[%s1948_s10 + $0x18] sm:$0xff] %v630_v59  ;;  %701 = vmatmul.mubr.f32.vlgmr.msra.gmra.mrb[4].mxu0 %v630_v59 }
 0x46b   : > { %1356 = vmatpush1.bf16.msra.mxu0 %v1955_v9  ;;  %876 = vmatprep.mubr.f32.mxu0 %v1716_v8 }
 0x46c   : > { %1358 = vmatprep.subr.bf16.mxu0 %v1957_v10 }
 0x46f   : > { %1360 = vmatpush1.bf16.msra.mxu0 %v1962_v15 }
 0x470   : > { %1362 = vmatprep.subr.bf16.mxu0 %v1966_v16 }
 0x473   : > { %1364 = vmatpush1.bf16.msra.mxu0 %v1970_v21 }
 0x474   : > { %1366 = vmatprep.subr.bf16.mxu0 %v1974_v22 }
 0x477   : > { %1368 = vmatpush1.bf16.msra.mxu0 %v1978_v27 }
 0x478   : > { %1370 = vmatprep.subr.bf16.mxu0 %v1982_v28 }
 0x47b   : > { %1372 = vmatpush1.bf16.msra.mxu0 %v1986_v33 }
 0x47c   : > { %1374 = vmatprep.subr.bf16.mxu0 %v1990_v34 }
 0x47f   : > { %1376 = vmatpush1.bf16.msra.mxu0 %v1994_v39 }
 0x480   : > { %1378 = vmatprep.subr.bf16.mxu0 %v1998_v40 }
 0x483   : > { %1380 = vmatpush1.bf16.msra.mxu0 %v2002_v45 }
 0x484   : > { %1382 = vmatprep.subr.bf16.mxu0 %v2006_v46 }
 0x487   : > { %1384 = vmatpush1.bf16.msra.mxu0 %v2010_v49 }
 0x53d   : > { %v702_v60 = vpop.f32.mrb[4].mxu0 }
 0x53e   : > { %v707_v61 = vadd.f32 %v1137_v4, %v702_v60  ;;  %v704_v62 = vpop.f32.mrb[5].mxu0 }
 0x53f   : > { %v708_v3 = vadd.f32 %v1138_v2, %v704_v62 }
 0x540   : > { %v1139_v63 = vmul.f32 -1.442695, %v707_v61 }
 0x541   : > { %v715_v5 = vmax.f32 %v708_v3, 0.0 }
 0x542   : > { %1521 = vpow2.f32 %v1139_v63 }
 0x543   : > { %v716_v6 = vsub.f32 %v715_v5, %v630_v59 }
 0x54c   : > { %v1522_v0 = vpop.eup %1521 }
 0x54d   : > { %v712_v1 = vadd.f32 1.0, %v1522_v0 }
 0x54f   : > { %1523 = vrcp.f32 %v712_v1 }
 0x559   : > { %v1524_v7 = vpop.eup %1523 }
 0x55a   : > { %v717_v11 = vmul.f32 %v1524_v7, %v716_v6 }
 0x55c   : > { %v718_v12 = vadd.f32 %v717_v11, %v630_v59 }
 0x55e   : > { %1140 = vst [vmem:[%s1948_s10 + $0x20] sm:$0xff] %v718_v12  ;;  %789 = vmatmul.mubr.f32.vlgmr.msra.gmra.mrb[4].mxu1 %v718_v12 }
 0x55f   : > { %1388 = vmatpush1.bf16.msra.mxu1 %v1955_v9  ;;  %964 = vmatprep.mubr.f32.mxu1 %v1716_v8  ;;  %v1141_v8 = vld [vmem:[%s1937_s21 + $0x50] sm:$0xff] }
 0x560   : > { %1390 = vmatprep.subr.bf16.mxu1 %v1957_v10 }
 0x563   : > { %1392 = vmatpush1.bf16.msra.mxu1 %v1962_v15 }
 0x564   : > { %1394 = vmatprep.subr.bf16.mxu1 %v1966_v16 }
 0x567   : > { %1396 = vmatpush1.bf16.msra.mxu1 %v1970_v21 }
 0x568   : > { %1398 = vmatprep.subr.bf16.mxu1 %v1974_v22 }
 0x56b   : > { %1400 = vmatpush1.bf16.msra.mxu1 %v1978_v27  ;;  %v1142_v27 = vld [vmem:[%s1937_s21 + $0x58] sm:$0xff] }
 0x56c   : > { %1402 = vmatprep.subr.bf16.mxu1 %v1982_v28 }
 0x56f   : > { %1404 = vmatpush1.bf16.msra.mxu1 %v1986_v33 }
 0x570   : > { %1406 = vmatprep.subr.bf16.mxu1 %v1990_v34 }
 0x573   : > { %1408 = vmatpush1.bf16.msra.mxu1 %v1994_v39 }
 0x574   : > { %1410 = vmatprep.subr.bf16.mxu1 %v1998_v40 }
 0x577   : > { %1412 = vmatpush1.bf16.msra.mxu1 %v2002_v45 }
 0x578   : > { %1414 = vmatprep.subr.bf16.mxu1 %v2006_v46  ;;  %v1145_v46 = vld [vmem:[%s1937_s21 + $0x60] sm:$0xff] }
 0x57b   : > { %1416 = vmatpush1.bf16.msra.mxu1 %v2010_v49 }
 0x631   : > { %v790_v9 = vpop.f32.mrb[4].mxu1 }
 0x632   : > { %v795_v10 = vadd.f32 %v1141_v8, %v790_v9  ;;  %v792_v15 = vpop.f32.mrb[5].mxu1 }
 0x633   : > { %v796_v28 = vadd.f32 %v1142_v27, %v792_v15 }
 0x634   : > { %v1143_v16 = vmul.f32 -1.442695, %v795_v10 }
 0x635   : > { %v803_v33 = vmax.f32 %v796_v28, 0.0 }
 0x636   : > { %1525 = vpow2.f32 %v1143_v16 }
 0x637   : > { %v804_v34 = vsub.f32 %v803_v33, %v718_v12 }
 0x640   : > { %v1526_v21 = vpop.eup %1525 }
 0x641   : > { %v800_v22 = vadd.f32 1.0, %v1526_v21 }
 0x643   : > { %1527 = vrcp.f32 %v800_v22 }
 0x64d   : > { %v1528_v39 = vpop.eup %1527 }
 0x64e   : > { %v805_v40 = vmul.f32 %v1528_v39, %v804_v34 }
 0x650   : > { %v806_v45 = vadd.f32 %v805_v40, %v718_v12 }
 0x652   : > { %1144 = vst [vmem:[%s1948_s10 + $0x28] sm:$0xff] %v806_v45  ;;  %877 = vmatmul.mubr.f32.vlgmr.msra.gmra.mrb[6].mxu0 %v806_v45 }
 0x725   : > { %v878_v49 = vpop.f32.mrb[6].mxu0 }
 0x726   : > { %v883_v13 = vadd.f32 %v1145_v46, %v878_v49  ;;  %v880_v14 = vpop.f32.mrb[7].mxu0 }
 0x727   : > { %v884_v23 = vadd.f32 %v1146_v20, %v880_v14 }
 0x728   : > { %v1147_v17 = vmul.f32 -1.442695, %v883_v13 }
 0x729   : > { %v891_v24 = vmax.f32 %v884_v23, 0.0 }
 0x72a   : > { %1529 = vpow2.f32 %v1147_v17 }
 0x72b   : > { %v892_v25 = vsub.f32 %v891_v24, %v806_v45 }
 0x734   : > { %v1530_v18 = vpop.eup %1529 }
 0x735   : > { %v888_v19 = vadd.f32 1.0, %v1530_v18 }
 0x737   : > { %1531 = vrcp.f32 %v888_v19 }
 0x741   : > { %v1532_v26 = vpop.eup %1531 }
 0x742   : > { %v893_v29 = vmul.f32 %v1532_v26, %v892_v25 }
 0x744   : > { %v894_v30 = vadd.f32 %v893_v29, %v806_v45 }
 0x746   : > { %1148 = vst [vmem:[%s1948_s10 + $0x30] sm:$0xff] %v894_v30  ;;  %965 = vmatmul.mubr.f32.vlgmr.msra.gmra.mrb[6].mxu1 %v894_v30 }
 0x819   : > { %v966_v32 = vpop.f32.mrb[6].mxu1 }
 0x81a   : > { %v971_v35 = vadd.f32 %v1149_v31, %v966_v32  ;;  %v968_v36 = vpop.f32.mrb[7].mxu1 }
 0x81b   : > { %v972_v43 = vadd.f32 %v1150_v42, %v968_v36 }
 0x81c   : > { %v1151_v37 = vmul.f32 -1.442695, %v971_v35 }
 0x81d   : > { %v979_v44 = vmax.f32 %v972_v43, 0.0 }
 0x81e   : > { %1533 = vpow2.f32 %v1151_v37 }
 0x81f   : > { %v980_v47 = vsub.f32 %v979_v44, %v894_v30 }
 0x828   : > { %v1534_v38 = vpop.eup %1533 }
 0x829   : > { %v976_v41 = vadd.f32 1.0, %v1534_v38 }
 0x82b   : > { %1535 = vrcp.f32 %v976_v41 }
 0x835   : > { %v1536_v48 = vpop.eup %1535 }
 0x836   : > { %v981_v50 = vmul.f32 %v1536_v48, %v980_v47 }
 0x838   : > { %v982_v51 = vadd.f32 %v981_v50, %v894_v30 }
 0x83a   : > { %1152 = vst [vmem:[%s1948_s10 + $0x38] sm:$0xff] %v982_v51  ;;  %985 = vst [vmem:[#allocation2] sm:$0xff] %v982_v51 }
 0x83b   : > { %1636 = shalt.err (!%p1633_p13)
}
 0x83c   : > { %s1637_s30 = scalar_lea.hbm %s2147_s9, 1024  ;;  %s1641_s4 = scalar_lea.hbm %s2202_s3, 2048 }
 0x83d   : > { %p1638_p4 = scmp.ne.s32.totalorder %s2147_s9, %s1637_s30  ;;  %p1642_p12 = scmp.lt.u32.totalorder %s2147_s9, %s2202_s3 }
 0x83e   : > { %p1643_p2 = scmp.lt.u32.totalorder %s1641_s4, %s1637_s30  ;;  %p1645_p10 = scmp.lt.u32.totalorder %s1637_s30, %s2147_s9 }
 0x83f   : > { %p1639_p5 = pnand %p1638_p4, %p2223_p11 }
 0x840   : > { %p1644_p3 = por %p1643_p2, %p1642_p12 }
 0x841   : > { %p1640_p7 = pneg %p1639_p5 }
 0x842   : > { %p1646_p1 = por %p1645_p10, %p1644_p3 }
 0x844   : > { %p1647_p0 = pnand %p1646_p1, %p1640_p7 }
 0x846   : > { %1650 = shalt.err (!%p1647_p0)
}
 0x847   : > { %s1718_s10 = smov 128   ;;  %s1719_s20 = smov 8  }
 0x848   : > { %1427 = dma.vmem_to_hbm [thread:$0]  (%p2223_p11), %s2149_s22, 1024, %s2147_s9, %s987_s18, %s1718_s10, %s1718_s10, %s1719_s20  }
 0x849 PF: > { %s1016_s11 = sand.u32 1, %s1689_s12   ;;  %p2224_p6 = scmp.ne.s32.totalorder %s2213_s24, 0 }
 0x84a   : > { %p2225_p9 = scmp.ge.s32.totalorder %s1709_s17, 2  ;;  %s1017_s7 = scalar_lea.sflag [#allocation5], %s1016_s11 }
 0x84c   : > { %p1441_p8 = pnand %p2225_p9, %p2224_p6 }
 0x84e   : > { %1684 = dma.done.wait (!%p1441_p8), %s1017_s7, 1024  }
 0x84f   : > { %1686 = vsyncadd (!%p1441_p8), %s1017_s7, 4294966272  ;;  %s20_s17 = sadd.s32 1, %s1709_s17   ;;  %s2226_s12 = smov %s1693_s13 }
 0x850   : > { %p17_p13 = scmp.ge.s32.totalorder %s20_s17, 4   ;;  %s2227_s13 = smov %s1697_s14 }
 0x851   : > { %s2228_s14 = smov %s1928_s6  ;;  %s2229_s15 = smov %s1705_s16 }
 0x852   : > { %s2230_s16 = smov %s2232_s26  ;;  %19 = sbr.rel (!%p17_p13) target bundleno = 7 (0x7), region = 104 }
 0x859   :  { %1022 = vsyncpa [#allocation4], 1 }
 0x85a   :  { %1024 = vsyncpa [#allocation4 + $0x1], 1 }
 0x85b   :  { %1025 = vsyncpa [#allocation7], 1 }
 0x85c   :  { %1026 = vsyncpa [#allocation5], 1 }
 0x85d   :  { %1028 = vsyncpa [#allocation5 + $0x1], 1 }

</bundles_post_ra>
